<compile_context>
chip_gen: v6e
topology: v6e:2x2x1
jax: 0.10.0
libtpu: 0.0.40
codegen_flags: <defaults>
</compile_context>

<pallas_src>
import functools

import jax
import jax.numpy as jnp
from jax.experimental import pallas as pl
from jax.experimental.pallas import tpu as pltpu


def _round_up(a, b):
    return ((a + b - 1) // b) * b


def _tpu_info():
    """(vmem_capacity_bytes, tensorcores_per_chip) with conservative fallbacks."""
    vmem_cap, cores = 128 << 20, 1
    try:
        info = pltpu.get_tpu_info()
        try:
            v = int(getattr(info, "vmem_capacity_bytes"))
            if v > 0:
                vmem_cap = v
        except Exception:
            pass
        for name in ("num_tensorcores", "tensorcore_count", "core_count", "num_cores"):
            try:
                c = int(getattr(info, name))
                if c > 0:
                    cores = c
                    break
            except Exception:
                continue
    except Exception:
        pass  # not on TPU / field names changed: keep defaults
    return vmem_cap, cores


# --------------------------------------------------------------------------
# Kernel
# --------------------------------------------------------------------------
def _swiglu_kernel(x_ref, w1_ref, b1_ref, w2_ref, b2_ref, w3_ref, b3_ref,
                   o_ref, *scratch, precision):
    # f32 output: accumulate directly in the VMEM-resident output tile
    # (its block index is constant across the hidden axis).
    acc_ref = scratch[0] if scratch else o_ref
    h_idx = pl.program_id(1)

    @pl.when(h_idx == 0)
    def _init():
        acc_ref[...] = jnp.zeros_like(acc_ref)

    # Cast activations to the weight dtype (bf16 weights => bf16 MXU path);
    # always accumulate in f32 via preferred_element_type.
    x = x_ref[...].astype(w1_ref.dtype)

    h = jnp.dot(x, w1_ref[...], preferred_element_type=jnp.float32,
                precision=precision) + b1_ref[...].astype(jnp.float32)
    g = jnp.dot(x, w2_ref[...], preferred_element_type=jnp.float32,
                precision=precision) + b2_ref[...].astype(jnp.float32)

    # silu(h) * g in f32 (VPU elementwise; sigmoid hits the EUP).
    act = (h * jax.nn.sigmoid(h)) * g

    # Down-projection partial sum for this hidden slice.
    acc_ref[...] += jnp.dot(act.astype(w3_ref.dtype), w3_ref[...],
                            preferred_element_type=jnp.float32,
                            precision=precision)

    @pl.when(h_idx == pl.num_programs(1) - 1)
    def _finalize():
        o_ref[...] = (acc_ref[...] + b3_ref[...].astype(jnp.float32)).astype(o_ref.dtype)


@functools.partial(
    jax.jit,
    static_argnames=("tm", "th", "vmem_limit_bytes", "acc_in_out",
                     "weight_buffers", "precision"),
)
def _swiglu_call(x2d, w1, b1, w2, b2, w3, b3, *, tm, th, vmem_limit_bytes,
                 acc_in_out, weight_buffers, precision):
    m, in_f = x2d.shape
    h_pad = w1.shape[1]
    out_f = w3.shape[1]
    nh = h_pad // th
    grid_m = pl.cdiv(m, tm)

    # Deeper weight prefetch (e.g. 3 on v5e) only if explicitly requested.
    w_kw = dict(pipeline_mode=pl.Buffered(weight_buffers)) if weight_buffers != 2 else {}

    in_specs = [
        pl.BlockSpec((tm, in_f), lambda i, h: (i, 0)),                 # x (resident over h)
        pl.BlockSpec((in_f, th), lambda i, h: (0, h), **w_kw),         # W1 slice
        pl.BlockSpec((1, th), lambda i, h: (0, h)),                    # b1 slice
        pl.BlockSpec((in_f, th), lambda i, h: (0, h), **w_kw),         # W2 slice
        pl.BlockSpec((1, th), lambda i, h: (0, h)),                    # b2 slice
        pl.BlockSpec((th, out_f), lambda i, h: (h, 0), **w_kw),        # W3 slice
        pl.BlockSpec((1, out_f), lambda i, h: (0, 0)),                 # b3
    ]
    out_spec = pl.BlockSpec((tm, out_f), lambda i, h: (i, 0))
    scratch = [] if acc_in_out else [pltpu.VMEM((tm, out_f), jnp.float32)]

    dsz = x2d.dtype.itemsize
    wsz = w1.dtype.itemsize
    cost = pl.CostEstimate(
        flops=2 * m * in_f * 2 * h_pad + 2 * m * h_pad * out_f,
        transcendentals=m * h_pad,
        bytes_accessed=(
            x2d.size * dsz
            # weights (and b1/b2) are re-streamed once per m tile
            + grid_m * (w1.size + w2.size + w3.size) * wsz
            + grid_m * (b1.size + b2.size) * b1.dtype.itemsize
            + b3.size * b3.dtype.itemsize
            + m * out_f * dsz
        ),
    )

    return pl.pallas_call(
        functools.partial(_swiglu_kernel, precision=precision),
        out_shape=jax.ShapeDtypeStruct((m, out_f), x2d.dtype),
        grid_spec=pltpu.PrefetchScalarGridSpec(
            num_scalar_prefetch=0,
            grid=(grid_m, nh),
            in_specs=in_specs,
            out_specs=out_spec,
            scratch_shapes=scratch,
        ),
        compiler_params=pltpu.CompilerParams(
            dimension_semantics=("parallel", "arbitrary"),
            vmem_limit_bytes=vmem_limit_bytes,
        ),
        cost_estimate=cost,
    )(x2d, w1, b1, w2, b2, w3, b3)


# --------------------------------------------------------------------------
# One-time parameter prep (hoist OUT of the per-call path)
# --------------------------------------------------------------------------
def prepare_swiglu_params(w1, b1, w2, b2, w3, b3, *, block_h=512, compute_dtype=None):
    """Pads the hidden dim to a multiple of the hidden tile `th` (itself a
    multiple of 128, so all weight slices and the silu/gate split stay
    lane-aligned), reshapes biases to (1, N) rows, and optionally casts the
    weights to `compute_dtype` (bf16 recommended: fast MXU path + half the
    weight-streaming HBM bytes).  Padding is exact: silu(0)*0 == 0 and the
    padded W3 rows are zero.  Returns (params, th)."""
    in_f, hidden = w1.shape
    out_f = w3.shape[1]
    th = min(_round_up(block_h, 128), _round_up(hidden, 128))
    h_pad = _round_up(hidden, th)
    if h_pad != hidden:
        dh = h_pad - hidden
        w1 = jnp.pad(w1, ((0, 0), (0, dh)))
        w2 = jnp.pad(w2, ((0, 0), (0, dh)))
        b1 = jnp.pad(b1, ((0, dh),))
        b2 = jnp.pad(b2, ((0, dh),))
        w3 = jnp.pad(w3, ((0, dh), (0, 0)))
    if compute_dtype is not None:
        w1, w2, w3 = (w.astype(compute_dtype) for w in (w1, w2, w3))
    params = (w1, b1.reshape(1, h_pad), w2, b2.reshape(1, h_pad),
              w3, b3.reshape(1, out_f))
    return params, th


# --------------------------------------------------------------------------
# Public wrapper
# --------------------------------------------------------------------------
def swiglu_pallas(x, params, th, *, block_m=None, weight_buffers=2, precision=None):
    """SwiGLU forward: silu(x@W1+b1) * (x@W2+b2) @ W3 + b3.

    `params` must come from `prepare_swiglu_params` (hidden dim padded to a
    multiple of `th`, biases as (1, N) rows, weights stored [in, out], i.e.
    transposed vs torch.nn.Linear weights)."""
    w1, b1, w2, b2, w3, b3 = params
    in_f = x.shape[-1]
    out_f = w3.shape[1]
    assert w1.shape[0] == in_f and w1.shape[1] % th == 0

    x2d = x.reshape(-1, in_f)
    m = x2d.shape[0]

    vmem_cap, cores = _tpu_info()

    # Row tile: sublane-aligned; sized so per-step MXU work covers the weight
    # slice DMA (roofline crossover ~240 rows v5e, ~700 v6e, ~310/TC v7x).
    sub = 16 if x.dtype.itemsize < 4 else 8
    if block_m is None:
        block_m = 512 if vmem_cap <= (64 << 20) else 768
    tm = min(_round_up(block_m, sub), _round_up(m, sub))

    # f32 outputs accumulate directly in the output tile (no f32 scratch).
    acc_in_out = x.dtype == jnp.float32

    def vmem_needed(tm_):
        dsz = x.dtype.itemsize
        wsz = w1.dtype.itemsize
        wbuf = max(int(weight_buffers), 2)
        need = 2 * tm_ * in_f * dsz                         # x tile
        need += wbuf * (2 * in_f * th + th * out_f) * wsz   # W1/W2/W3 slices
        need += 2 * (2 * th + out_f) * b1.dtype.itemsize    # biases
        need += 2 * tm_ * out_f * dsz                       # output tile
        if not acc_in_out:
            need += tm_ * out_f * 4                         # f32 accumulator
        return need

    # Shrink tm until the working set fits this part's VMEM (v7x: 64 MiB).
    while vmem_needed(tm) > int(0.8 * vmem_cap) and tm > sub:
        tm = max(_round_up(tm // 2, sub), sub)

    grid_m = pl.cdiv(m, tm)
    # Multi-TensorCore parts (v7x): keep the "parallel" axis >= num cores so
    # the second core is not idle at small m (decode).
    if cores >= 2 and grid_m < cores and m > sub:
        tm = max(_round_up(pl.cdiv(m, cores), sub), sub)
        grid_m = pl.cdiv(m, tm)

    vmem_limit = int(min(max(vmem_needed(tm) + (16 << 20), 32 << 20), vmem_cap))

    out2d = _swiglu_call(
        x2d, w1, b1, w2, b2, w3, b3,
        tm=int(tm), th=int(th), vmem_limit_bytes=vmem_limit,
        acc_in_out=bool(acc_in_out), weight_buffers=int(weight_buffers),
        precision=precision,
    )
    return out2d.reshape(*x.shape[:-1], out_f)


# --------------------------------------------------------------------------
# Parameter init (mirrors SwiGLU.__init__/_init_weights) and reference
# --------------------------------------------------------------------------
def init_swiglu_params(key, in_features, hidden_features, out_features,
                       dtype=jnp.float32):
    """Weights ~ N(0, 0.02); biases use PyTorch Linear's default
    uniform(-1/sqrt(fan_in), 1/sqrt(fan_in)).  Weights stored [in, out]."""
    k1, k2, k3, kb1, kb2, kb3 = jax.random.split(key, 6)
    w1 = (0.02 * jax.random.normal(k1, (in_features, hidden_features))).astype(dtype)
    w2 = (0.02 * jax.random.normal(k2, (in_features, hidden_features))).astype(dtype)
    w3 = (0.02 * jax.random.normal(k3, (hidden_features, out_features))).astype(dtype)
    bnd1 = 1.0 / jnp.sqrt(in_features)
    bnd3 = 1.0 / jnp.sqrt(hidden_features)
    b1 = jax.random.uniform(kb1, (hidden_features,), minval=-bnd1, maxval=bnd1).astype(dtype)
    b2 = jax.random.uniform(kb2, (hidden_features,), minval=-bnd1, maxval=bnd1).astype(dtype)
    b3 = jax.random.uniform(kb3, (out_features,), minval=-bnd3, maxval=bnd3).astype(dtype)
    return w1, b1, w2, b2, w3, b3


def swiglu_reference(x, w1, b1, w2, b2, w3, b3):
    h = jnp.dot(x, w1) + b1
    g = jnp.dot(x, w2) + b2
    act = jax.nn.silu(h) * g
    return jnp.dot(act, w3) + b3


if __name__ == "__main__":
    key = jax.random.PRNGKey(0)
    kx, kp = jax.random.split(key)

    # Test 1: small f32, single hidden step (hidden 64 is padded to th=128).
    batch, seq = 2, 8
    in_f, hid_f, out_f = 32, 64, 32
    x = jax.random.normal(kx, (batch, seq, in_f), dtype=jnp.float32)
    raw = init_swiglu_params(kp, in_f, hid_f, out_f)
    prepped, th = prepare_swiglu_params(*raw)
    out = jax.block_until_ready(swiglu_pallas(x, prepped, th))
    ref = swiglu_reference(x, *raw)
    assert out.shape == (batch, seq, out_f)
    assert jnp.allclose(out, ref, atol=1e-5, rtol=1e-5), "mismatch vs reference"

    # Test 2: multi-step hidden reduction (th=128, 3 hidden tiles), f32,
    # f32-output in-place accumulation path.
    in2, hid2, out2 = 64, 384, 64
    x2 = jax.random.normal(kx, (4, 8, in2), dtype=jnp.float32)
    raw2 = init_swiglu_params(kp, in2, hid2, out2)
    prepped2, th2 = prepare_swiglu_params(*raw2, block_h=128)
    o2 = jax.block_until_ready(swiglu_pallas(x2, prepped2, th2))
    r2 = swiglu_reference(x2, *raw2)
    assert o2.shape == (4, 8, out2)
    assert jnp.allclose(o2, r2, atol=1e-5, rtol=1e-5), "mismatch (tiled hidden)"

    # Test 3: bf16 fast path (one-time bf16 weight prep, bf16 activations,
    # f32 accumulation in the scratch accumulator since output dtype is bf16).
    x3 = x2.astype(jnp.bfloat16)
    prepped3, th3 = prepare_swiglu_params(*raw2, block_h=128,
                                          compute_dtype=jnp.bfloat16)
    o3 = jax.block_until_ready(swiglu_pallas(x3, prepped3, th3))
    assert o3.shape == (4, 8, out2)
    assert jnp.allclose(o3.astype(jnp.float32), r2, atol=2e-2, rtol=5e-2), \
        "mismatch (bf16 path)"

    print("KERNEL_OK")
</pallas_src>

<mosaic_0001>
module attributes {stable_mosaic.version = 11 : i64} {
  func.func @_swiglu_kernel(%arg0: i32, %arg1: i32, %arg2: memref<16x32xf32, #tpu.memory_space<vmem>>, %arg3: memref<32x128xf32, #tpu.memory_space<vmem>>, %arg4: memref<1x128xf32, #tpu.memory_space<vmem>>, %arg5: memref<32x128xf32, #tpu.memory_space<vmem>>, %arg6: memref<1x128xf32, #tpu.memory_space<vmem>>, %arg7: memref<128x32xf32, #tpu.memory_space<vmem>>, %arg8: memref<1x32xf32, #tpu.memory_space<vmem>>, %arg9: memref<16x32xf32, #tpu.memory_space<vmem>>) attributes {dimension_semantics = [#tpu.dimension_semantics<parallel>, #tpu.dimension_semantics<arbitrary>], iteration_bounds = array<i64: 1, 1>, scalar_prefetch = 0 : i64, scratch_operands = 0 : i64, tpu.core_type = #tpu.core_type<tc>, window_params = [{transform_indices = @transform_0, window_bounds = array<i64: 16, 32>}, {transform_indices = @transform_1, window_bounds = array<i64: 32, 128>}, {transform_indices = @transform_2, window_bounds = array<i64: 1, 128>}, {transform_indices = @transform_3, window_bounds = array<i64: 32, 128>}, {transform_indices = @transform_4, window_bounds = array<i64: 1, 128>}, {transform_indices = @transform_5, window_bounds = array<i64: 128, 32>}, {pipeline_mode = #tpu.pipeline_mode<synchronous>, transform_indices = @transform_6, window_bounds = array<i64: 1, 32>}, {transform_indices = @transform_7, window_bounds = array<i64: 16, 32>}]} {
    %c0_i32 = arith.constant 0 : i32
    %0 = arith.cmpi eq, %arg1, %c0_i32 : i32
    %1 = arith.extui %0 : i1 to i32
    %c0_i32_0 = arith.constant 0 : i32
    %2 = arith.cmpi ne, %1, %c0_i32_0 : i32
    scf.if %2 {
      %cst_21 = arith.constant 0.000000e+00 : f32
      %29 = vector.broadcast %cst_21 : f32 to vector<16x32xf32>
      %c0_22 = arith.constant 0 : index
      %c0_23 = arith.constant 0 : index
      %30 = vector.load %arg9[%c0_22, %c0_23] : memref<16x32xf32, #tpu.memory_space<vmem>>, vector<16x32xf32>
      tpu.vector_store %arg9[%c0_22, %c0_23], %29 {strides = array<i32>} : memref<16x32xf32, #tpu.memory_space<vmem>>, vector<16x32xf32>,
    } else {
    }
    %c0 = arith.constant 0 : index
    %c0_1 = arith.constant 0 : index
    %3 = vector.load %arg2[%c0, %c0_1] : memref<16x32xf32, #tpu.memory_space<vmem>>, vector<16x32xf32>
    %c0_2 = arith.constant 0 : index
    %c0_3 = arith.constant 0 : index
    %4 = vector.load %arg3[%c0_2, %c0_3] : memref<32x128xf32, #tpu.memory_space<vmem>>, vector<32x128xf32>
    %cst = arith.constant dense<0.000000e+00> : vector<16x128xf32>
    %5 = tpu.matmul %3, %4, %cst {dimension_numbers = #tpu.dot_dimension_numbers<[1], [0], [0], [1], [0, 0, 1, 1], [], []>} : vector<16x32xf32>, vector<32x128xf32>, vector<16x128xf32> -> vector<16x128xf32>
    %c0_4 = arith.constant 0 : index
    %c0_5 = arith.constant 0 : index
    %6 = vector.load %arg4[%c0_4, %c0_5] : memref<1x128xf32, #tpu.memory_space<vmem>>, vector<1x128xf32>
    %7 = vector.broadcast %6 : vector<1x128xf32> to vector<16x128xf32>
    %8 = arith.addf %5, %7 : vector<16x128xf32>
    %c0_6 = arith.constant 0 : index
    %c0_7 = arith.constant 0 : index
    %9 = vector.load %arg5[%c0_6, %c0_7] : memref<32x128xf32, #tpu.memory_space<vmem>>, vector<32x128xf32>
    %cst_8 = arith.constant dense<0.000000e+00> : vector<16x128xf32>
    %10 = tpu.matmul %3, %9, %cst_8 {dimension_numbers = #tpu.dot_dimension_numbers<[1], [0], [0], [1], [0, 0, 1, 1], [], []>} : vector<16x32xf32>, vector<32x128xf32>, vector<16x128xf32> -> vector<16x128xf32>
    %c0_9 = arith.constant 0 : index
    %c0_10 = arith.constant 0 : index
    %11 = vector.load %arg6[%c0_9, %c0_10] : memref<1x128xf32, #tpu.memory_space<vmem>>, vector<1x128xf32>
    %12 = vector.broadcast %11 : vector<1x128xf32> to vector<16x128xf32>
    %13 = arith.addf %10, %12 : vector<16x128xf32>
    %14 = arith.negf %8 : vector<16x128xf32>
    %15 = math.exp %14 : vector<16x128xf32>
    %cst_11 = arith.constant 1.000000e+00 : f32
    %16 = vector.broadcast %cst_11 : f32 to vector<16x128xf32>
    %17 = arith.addf %16, %15 : vector<16x128xf32>
    %18 = arith.divf %16, %17 : vector<16x128xf32>
    %19 = arith.mulf %8, %18 : vector<16x128xf32>
    %20 = arith.mulf %19, %13 : vector<16x128xf32>
    %c0_12 = arith.constant 0 : index
    %c0_13 = arith.constant 0 : index
    %21 = vector.load %arg9[%c0_12, %c0_13] : memref<16x32xf32, #tpu.memory_space<vmem>>, vector<16x32xf32>
    %c0_14 = arith.constant 0 : index
    %c0_15 = arith.constant 0 : index
    %22 = vector.load %arg7[%c0_14, %c0_15] : memref<128x32xf32, #tpu.memory_space<vmem>>, vector<128x32xf32>
    %cst_16 = arith.constant dense<0.000000e+00> : vector<16x32xf32>
    %23 = tpu.matmul %20, %22, %cst_16 {dimension_numbers = #tpu.dot_dimension_numbers<[1], [0], [0], [1], [0, 0, 1, 1], [], []>} : vector<16x128xf32>, vector<128x32xf32>, vector<16x32xf32> -> vector<16x32xf32>
    %24 = arith.addf %21, %23 : vector<16x32xf32>
    %c0_17 = arith.constant 0 : index
    %c0_18 = arith.constant 0 : index
    %25 = vector.load %arg9[%c0_17, %c0_18] : memref<16x32xf32, #tpu.memory_space<vmem>>, vector<16x32xf32>
    tpu.vector_store %arg9[%c0_17, %c0_18], %24 {strides = array<i32>} : memref<16x32xf32, #tpu.memory_space<vmem>>, vector<16x32xf32>,
    %c0_i32_19 = arith.constant 0 : i32
    %26 = arith.cmpi eq, %arg1, %c0_i32_19 : i32
    %27 = arith.extui %26 : i1 to i32
    %c0_i32_20 = arith.constant 0 : i32
    %28 = arith.cmpi ne, %27, %c0_i32_20 : i32
    scf.if %28 {
      %c0_21 = arith.constant 0 : index
      %c0_22 = arith.constant 0 : index
      %29 = vector.load %arg9[%c0_21, %c0_22] : memref<16x32xf32, #tpu.memory_space<vmem>>, vector<16x32xf32>
      %c0_23 = arith.constant 0 : index
      %c0_24 = arith.constant 0 : index
      %30 = vector.load %arg8[%c0_23, %c0_24] : memref<1x32xf32, #tpu.memory_space<vmem>>, vector<1x32xf32>
      %31 = vector.broadcast %30 : vector<1x32xf32> to vector<16x32xf32>
      %32 = arith.addf %29, %31 : vector<16x32xf32>
      %c0_25 = arith.constant 0 : index
      %c0_26 = arith.constant 0 : index
      %33 = vector.load %arg9[%c0_25, %c0_26] : memref<16x32xf32, #tpu.memory_space<vmem>>, vector<16x32xf32>
      tpu.vector_store %arg9[%c0_25, %c0_26], %32 {strides = array<i32>} : memref<16x32xf32, #tpu.memory_space<vmem>>, vector<16x32xf32>,
    } else {
    }
    return
  }
  func.func @transform_0(%arg0: i32, %arg1: i32) -> (i32, i32) {
    %c0_i32 = arith.constant 0 : i32
    %c0_i32_0 = arith.constant 0 : i32
    return %arg0, %c0_i32 : i32, i32
  }
  func.func @transform_1(%arg0: i32, %arg1: i32) -> (i32, i32) {
    %c0_i32 = arith.constant 0 : i32
    %c0_i32_0 = arith.constant 0 : i32
    return %c0_i32, %arg1 : i32, i32
  }
  func.func @transform_2(%arg0: i32, %arg1: i32) -> (i32, i32) {
    %c0_i32 = arith.constant 0 : i32
    %c0_i32_0 = arith.constant 0 : i32
    return %c0_i32, %arg1 : i32, i32
  }
  func.func @transform_3(%arg0: i32, %arg1: i32) -> (i32, i32) {
    %c0_i32 = arith.constant 0 : i32
    %c0_i32_0 = arith.constant 0 : i32
    return %c0_i32, %arg1 : i32, i32
  }
  func.func @transform_4(%arg0: i32, %arg1: i32) -> (i32, i32) {
    %c0_i32 = arith.constant 0 : i32
    %c0_i32_0 = arith.constant 0 : i32
    return %c0_i32, %arg1 : i32, i32
  }
  func.func @transform_5(%arg0: i32, %arg1: i32) -> (i32, i32) {
    %c0_i32 = arith.constant 0 : i32
    %c0_i32_0 = arith.constant 0 : i32
    return %arg1, %c0_i32 : i32, i32
  }
  func.func @transform_6(%arg0: i32, %arg1: i32) -> (i32, i32) {
    %c0_i32 = arith.constant 0 : i32
    %c0_i32_0 = arith.constant 0 : i32
    %c0_i32_1 = arith.constant 0 : i32
    return %c0_i32, %c0_i32_0 : i32, i32
  }
  func.func @transform_7(%arg0: i32, %arg1: i32) -> (i32, i32) {
    %c0_i32 = arith.constant 0 : i32
    %c0_i32_0 = arith.constant 0 : i32
    return %arg0, %c0_i32 : i32, i32
  }
}

</mosaic_0001>

<bundles_post_ra>
// kernel: _swiglu_call.1
= control target key start
LH: loop header
LB: loop body
LE: loop exit
PB: predicated region body
PF: predicated region fallthrough
CT: control target
= control target key end

     0   :  { %vm31_vm0 = vcmask 261120   ;;  %s634_s0 = inlined_call_operand.vmem [shape: f32[16,32], index: 0, kind: input, shape index: {}]   ;;  %s635_s1 = inlined_call_operand.vmem [shape: f32[32,128], index: 1, kind: input, shape index: {}]   ;;  %s636_s2 = inlined_call_operand.vmem [shape: f32[1,128], index: 2, kind: input, shape index: {}]   ;;  %s637_s3 = inlined_call_operand.vmem [shape: f32[32,128], index: 3, kind: input, shape index: {}]   ;;  %s638_s4 = inlined_call_operand.vmem [shape: f32[1,128], index: 4, kind: input, shape index: {}]   ;;  %s639_s5 = inlined_call_operand.vmem [shape: f32[128,32], index: 5, kind: input, shape index: {}]   ;;  %s640_s6 = inlined_call_operand.vmem [shape: f32[1,32], index: 6, kind: input, shape index: {}]   ;;  %s641_s7 = inlined_call_operand.hbm [shape: f32[16,32], index: 7, kind: output, shape index: {}]  }
   0x1   :  { %v39_v0 = vld [vmem:[%s635_s1 + $0x18] sm:$0xff]  ;;  %v38_v1 = vld [vmem:[%s635_s1 + $0x10] sm:$0xff]  ;;  %v34_v2 = vld [vmem:[%s634_s0] sm:$0xff] }
   0x2   :  { %399 = vmatprep.subr.mxu1 %v39_v0  ;;  %v37_v3 = vld [vmem:[%s635_s1 + $0x8] sm:$0xff]  ;;  %407 = vmatprep.mubr.msk.f32.mxu1 %vm31_vm0, %v34_v2 }
   0x3   :  { %400 = vmatpush3.msra.mxu1 %v39_v0 }
   0x4   :  { %401 = vmatprep.subr.mxu1 %v38_v1 }
   0x5   :  { %12 = vsyncpa [#allocation3], 0  ;;  %402 = vmatpush3.msra.mxu1 %v38_v1  ;;  %v36_v4 = vld [vmem:[%s635_s1] sm:$0xff]  ;;  %v35_v5 = vld [vmem:[%s634_s0 + $0x8] sm:$0xff]  ;;  %v490_v26 = vmov 0.0   ;;  %s491_s27 = smov [#allocation2]  }
   0x6   :  { %403 = vmatprep.subr.mxu1 %v37_v3  ;;  %v132_v6 = vld [vmem:[%s637_s3 + $0x18] sm:$0xff]  ;;  %v131_v7 = vld [vmem:[%s637_s3 + $0x10] sm:$0xff]  ;;  %v130_v8 = vld [vmem:[%s637_s3 + $0x8] sm:$0xff]  ;;  %33 = vst.msk [vmem:[#allocation2 + $0x8] sm:$0xff] %vm31_vm0, %v490_v26  ;;  %s349_s28 = sshll.u32 %s491_s27, 4  ;;  %s350_s28 = int_to_ptr.vmem [resolvable:$true] %s349_s28 }
   0x7   :  { %404 = vmatpush3.msra.mxu1 %v37_v3  ;;  %v129_v9 = vld [vmem:[%s637_s3] sm:$0xff]  ;;  %v248_v10 = vld [vmem:[%s639_s5 + $0x78] sm:$0xff]  ;;  %v247_v11 = vld [vmem:[%s639_s5 + $0x70] sm:$0xff]  ;;  %32 = vst.msk [vmem:[#allocation2] sm:$0xff] %vm31_vm0, %v490_v26  ;;  %s468_s29 = scalar_lea.vmem %s350_s28, 256  ;;  %p473_p1 = scmp.lt.s32.totalorder %s350_s28, %s350_s28 }
   0x8   :  { %405 = vmatprep.subr.mxu1 %v36_v4  ;;  %421 = vmatprep.subr.mxu0 %v248_v10  ;;  %v246_v12 = vld [vmem:[%s639_s5 + $0x68] sm:$0xff]  ;;  %v245_v13 = vld [vmem:[%s639_s5 + $0x60] sm:$0xff]  ;;  %v244_v14 = vld [vmem:[%s639_s5 + $0x58] sm:$0xff]  ;;  %p469_p0 = scmp.ne.s32.totalorder %s350_s28, %s468_s29  ;;  %p474_p2 = scmp.lt.s32.totalorder %s468_s29, %s468_s29 }
   0x9   :  { %406 = vmatpush3.msra.mxu1 %v36_v4  ;;  %422 = vmatpush3.msra.mxu0 %v248_v10  ;;  %v243_v15 = vld [vmem:[%s639_s5 + $0x50] sm:$0xff]  ;;  %v242_v16 = vld [vmem:[%s639_s5 + $0x48] sm:$0xff]  ;;  %v241_v17 = vld [vmem:[%s639_s5 + $0x40] sm:$0xff] }
   0xa   :  { %408 = vmatmul.mubr.msk.f32.vlgmr.msra.gmra.mxu1 %vm31_vm0, %v35_v5  ;;  %410 = vmatprep.subr.mxu1 %v132_v6  ;;  %v240_v18 = vld [vmem:[%s639_s5 + $0x38] sm:$0xff]  ;;  %v239_v19 = vld [vmem:[%s639_s5 + $0x30] sm:$0xff]  ;;  %v238_v20 = vld [vmem:[%s639_s5 + $0x28] sm:$0xff]  ;;  %p475_p3 = por %p474_p2, %p473_p1 }
   0xb   :  { %411 = vmatpush3.msra.mxu1 %v132_v6  ;;  %418 = vmatprep.mubr.msk.f32.mxu1 %vm31_vm0, %v34_v2  ;;  %v237_v21 = vld [vmem:[%s639_s5 + $0x20] sm:$0xff]  ;;  %v236_v22 = vld [vmem:[%s639_s5 + $0x18] sm:$0xff]  ;;  %v235_v23 = vld [vmem:[%s639_s5 + $0x10] sm:$0xff] }
   0xc   :  { %412 = vmatprep.subr.mxu1 %v131_v7  ;;  %423 = vmatprep.subr.mxu0 %v247_v11  ;;  %v234_v24 = vld [vmem:[%s639_s5 + $0x8] sm:$0xff]  ;;  %v233_v25 = vld [vmem:[%s639_s5] sm:$0xff]  ;;  %p476_p4 = pnand %p475_p3, %p469_p0 }
   0xd   :  { %413 = vmatpush3.msra.mxu1 %v131_v7  ;;  %424 = vmatpush3.msra.mxu0 %v247_v11  ;;  %v360_v27 = vld [vmem:[%s636_s2] ss:$0 sm:$0xff]  ;;  %v232_v49 = vld [vmem:[#allocation2 + $0x8] sm:$0xff] }
   0xe   :  { %414 = vmatprep.subr.mxu1 %v130_v8  ;;  %425 = vmatprep.subr.mxu0 %v246_v12  ;;  %v363_v39 = vld [vmem:[%s638_s4] ss:$0 sm:$0xff] }
   0xf   :  { %415 = vmatpush3.msra.mxu1 %v130_v8  ;;  %426 = vmatpush3.msra.mxu0 %v246_v12  ;;  %v231_v51 = vld [vmem:[#allocation2] sm:$0xff] }
  0x10   :  { %416 = vmatprep.subr.mxu1 %v129_v9  ;;  %427 = vmatprep.subr.mxu0 %v245_v13  ;;  %v368_v55 = vld [vmem:[%s640_s6] ss:$0 sm:$0xff] }
  0x11   :  { %417 = vmatpush3.msra.mxu1 %v129_v9  ;;  %428 = vmatpush3.msra.mxu0 %v245_v13 }
  0x12   :  { %419 = vmatmul.mubr.msk.f32.vlgmr.msra.gmra.mxu1 %vm31_vm0, %v35_v5  ;;  %429 = vmatprep.subr.mxu0 %v244_v14 }
  0x13   :  { %430 = vmatpush3.msra.mxu0 %v244_v14 }
  0x14   :  { %431 = vmatprep.subr.mxu0 %v243_v15 }
  0x15   :  { %432 = vmatpush3.msra.mxu0 %v243_v15 }
  0x16   :  { %433 = vmatprep.subr.mxu0 %v242_v16 }
  0x17   :  { %434 = vmatpush3.msra.mxu0 %v242_v16 }
  0x18   :  { %435 = vmatprep.subr.mxu0 %v241_v17 }
  0x19   :  { %436 = vmatpush3.msra.mxu0 %v241_v17 }
  0x1a   :  { %437 = vmatprep.subr.mxu0 %v240_v18 }
  0x1b   :  { %438 = vmatpush3.msra.mxu0 %v240_v18 }
  0x1c   :  { %439 = vmatprep.subr.mxu0 %v239_v19 }
  0x1d   :  { %440 = vmatpush3.msra.mxu0 %v239_v19 }
  0x1e   :  { %441 = vmatprep.subr.mxu0 %v238_v20 }
  0x1f   :  { %442 = vmatpush3.msra.mxu0 %v238_v20 }
  0x20   :  { %443 = vmatprep.subr.mxu0 %v237_v21 }
  0x21   :  { %444 = vmatpush3.msra.mxu0 %v237_v21 }
  0x22   :  { %445 = vmatprep.subr.mxu0 %v236_v22 }
  0x23   :  { %446 = vmatpush3.msra.mxu0 %v236_v22 }
  0x24   :  { %447 = vmatprep.subr.mxu0 %v235_v23 }
  0x25   :  { %448 = vmatpush3.msra.mxu0 %v235_v23 }
  0x26   :  { %449 = vmatprep.subr.mxu0 %v234_v24 }
  0x27   :  { %450 = vmatpush3.msra.mxu0 %v234_v24 }
  0x28   :  { %451 = vmatprep.subr.mxu0 %v233_v25 }
  0x29   :  { %452 = vmatpush3.msra.mxu0 %v233_v25 }
  0xca   :  { %v409_v28 = vpop.f32.mrf.mxu1 }
  0xcb   :  { %v126_v29 = vadd.f32 %v409_v28, %v360_v27 }
  0xcc   :  { %v120_v30 = vpop.f32.mrf.mxu1 }
  0xcd   :  { %v367_v31 = vmul.f32 -1.442695, %v126_v29  ;;  %v121_v32 = vadd.f32 %v360_v27, %v120_v30 }
  0xcf   :  { %460 = vpow2.f32 %v367_v31  ;;  %v366_v33 = vmul.f32 -1.442695, %v121_v32 }
  0xd1   :  { %462 = vpow2.f32 %v366_v33 }
  0xd2   :  { %v420_v38 = vpop.f32.mrf.mxu1 }
  0xd3   :  { %v212_v44 = vadd.f32 %v420_v38, %v363_v39 }
  0xd4   :  { %v206_v41 = vpop.f32.mrf.mxu1 }
  0xd5   :  { %v207_v45 = vadd.f32 %v363_v39, %v206_v41 }
  0xdc   :  { %v461_v34 = vpop.eup %460 }
  0xdd   :  { %v222_v35 = vadd.f32 1.0, %v461_v34 }
  0xde   :  { %v463_v36 = vpop.eup %462 }
  0xdf   :  { %464 = vrcp.f32 %v222_v35  ;;  %v221_v37 = vadd.f32 1.0, %v463_v36 }
  0xe1   :  { %466 = vrcp.f32 %v221_v37 }
  0xec   :  { %v465_v40 = vpop.eup %464 }
  0xed   :  { %v228_v43 = vmul.f32 %v465_v40, %v126_v29 }
  0xee   :  { %v467_v42 = vpop.eup %466 }
  0xef   :  { %v227_v46 = vmul.f32 %v467_v42, %v121_v32  ;;  %v230_v48 = vmul.f32 %v228_v43, %v212_v44 }
  0xf1   :  { %v229_v47 = vmul.f32 %v227_v46, %v207_v45 }
  0xf3   :  { %453 = vmatprep.mubr.f32.mxu0 %v229_v47 }
  0xf4   :  { %454 = vmatmul.mubr.f32.vlgmr.msra.gmra.mxu0 %v230_v48 }
 0x1b4   :  { %v455_v50 = vpop.f32.mrf.mxu0 }
 0x1b5   :  { %v325_v52 = vadd.f32 %v455_v50, %v232_v49 }
 0x1b6   :  { %v315_v53 = vpop.f32.mrf.mxu0 }
 0x1b7   :  { %327 = vst.msk [vmem:[#allocation2 + $0x8] sm:$0xff] %vm31_vm0, %v325_v52  ;;  %v324_v54 = vadd.f32 %v315_v53, %v231_v51 }
 0x1b9   :  { %326 = vst.msk [vmem:[#allocation2] sm:$0xff] %vm31_vm0, %v324_v54 }
 0x1be   :  { %v332_v56 = vld [vmem:[#allocation2 + $0x8] sm:$0xff] }
 0x1bf   :  { %v341_v57 = vadd.f32 %v368_v55, %v332_v56 }
 0x1c0   :  { %v331_v58 = vld [vmem:[#allocation2] sm:$0xff] }
 0x1c1   :  { %v340_v59 = vadd.f32 %v368_v55, %v331_v58  ;;  %343 = vst.msk [vmem:[#allocation2 + $0x8] sm:$0xff] %vm31_vm0, %v341_v57 }
 0x1c3   :  { %342 = vst.msk [vmem:[#allocation2] sm:$0xff] %vm31_vm0, %v340_v59 }
 0x1c4   :  { %479 = shalt.err (!%p476_p4)
}
 0x1c5   :  { %s492_s30 = smov 128   ;;  %s493_s6 = smov 8  }
 0x1c6   :  { %355 = dma.vmem_to_hbm [thread:$0]  %s350_s28, 256, %s641_s7, [#allocation3], %s492_s30, %s492_s30, %s493_s6  }
 0x1c7   :  { %488 = dma.done.wait [#allocation3], 256  }
 0x1c8   :  { %489 = vsyncadd [#allocation3], 4294967040 }
 0x1c9   :  { %359 = vsyncpa [#allocation3], 1 }

</bundles_post_ra>
